<compile_context>
chip_gen: v5e
topology: v5e:2x2
jax: 0.10.0
libtpu: 0.0.40
codegen_flags: <defaults>
</compile_context>

<pallas_src>
import jax
import jax.numpy as jnp
from jax.experimental import pallas as pl
from jax.experimental.pallas import tpu as pltpu

SEQ = 30       # dense1 input features (contracted sequence axis)
HID = 768      # dense2 input features
OUT = 20       # dense2 output features
GROUP = 8      # sublane-aligned reduction group along SEQ


def classifier_kernel(x_ref, w1_ref, b1_ref, w2_ref, b2_ref, o_ref):
    # x_ref : (TB, SEQ, HID)  batch tile of embeds (f32 or bf16)
    # w1_ref: (SEQ, HID)      dense1.weight pre-broadcast along HID (resident)
    # b1_ref: (1, 1)          dense1.bias scalar in SMEM
    # w2_ref: (HID, OUT)      dense2.weight pre-transposed (resident)
    # b2_ref: (1, OUT)        dense2.bias (resident)
    # o_ref : (TB, OUT)
    tb = x_ref.shape[0]
    b1 = b1_ref[0, 0]

    # dense1 along the sequence axis:
    #   feats[b, d] = sum_s x[b, s, d] * w1[s, d] + b1
    # Accumulate (TB, HID) f32 in sublane-aligned groups of 8 along SEQ so the
    # full (TB, SEQ, HID) f32 product / upcast is never materialized in VMEM.
    # Pure VPU work; entirely hidden under the HBM DMA.
    acc = jnp.zeros((tb, HID), jnp.float32)
    for s0 in range(0, SEQ, GROUP):                       # 4 static groups
        g = min(GROUP, SEQ - s0)
        xg = x_ref[:, pl.ds(s0, g), :].astype(jnp.float32)   # (TB, g, HID)
        wg = w1_ref[pl.ds(s0, g), :]                          # (g, HID)
        acc = acc + jnp.sum(xg * wg[None, :, :], axis=1)
    feats = jnp.maximum(acc + b1, 0.0)                        # ReLU, (TB, HID)

    # dense2: (TB, 768) @ (768, 20) + bias on the MXU (tiny, fully hidden).
    out = jnp.dot(feats, w2_ref[...], preferred_element_type=jnp.float32)
    o_ref[...] = (out + b2_ref[...]).astype(o_ref.dtype)


def _round_up(x, m):
    return ((x + m - 1) // m) * m


def _vmem_capacity_bytes():
    try:
        info = pltpu.get_tpu_info()
        return int(getattr(info, "vmem_capacity_bytes", 64 << 20))
    except Exception:
        return 64 << 20   # conservative default (v7x per-TC)


def classifier_forward(embeds, w1, b1, w2, b2, *, block_b=None):
    """Fused classifier forward.

    embeds: (B, 30, 768) f32 (or bf16 straight from the producer for ~2x less
            HBM traffic; the kernel upcasts and accumulates in f32)
    w1: (1, 30), b1: (1,)    -- dense1
    w2: (20, 768), b2: (20,) -- dense2
    block_b: batch tile; defaults to 256 on v5e/v6e (128 MiB VMEM) and 128 on
             v7x (64 MiB/TC). Kept a multiple of 8.
    """
    B, S, D = embeds.shape
    assert S == SEQ and D == HID, (S, D)

    vmem_cap = _vmem_capacity_bytes()
    if block_b is None:
        block_b = 256 if vmem_cap >= (100 << 20) else 128

    if B <= 8:
        TB = B                      # single step; can't split below 8 rows
    elif B <= block_b:
        # Split small batches into >= 2 grid steps so both v7x TensorCores
        # get work under dimension_semantics=("parallel",).
        TB = min(_round_up(pl.cdiv(B, 2), 8), _round_up(B, 8))
    else:
        TB = block_b

    grid = (pl.cdiv(B, TB),)

    # Pre-broadcast dense1.weight along HID so the kernel does a plain
    # elementwise multiply (no in-kernel lane broadcast); 92 KiB, resident.
    w1_b = jnp.broadcast_to(jnp.asarray(w1, jnp.float32).reshape(SEQ, 1),
                            (SEQ, HID))
    b1_s = jnp.asarray(b1, jnp.float32).reshape(1, 1)
    w2_t = jnp.asarray(w2, jnp.float32).T                      # (HID, OUT)
    b2_r = jnp.asarray(b2, jnp.float32).reshape(1, OUT)

    # VMEM budget: double-buffered x tile + per-group reduction temporaries +
    # resident weights/bias/output + headroom; capped at 75% of physical VMEM.
    itemsize = jnp.dtype(embeds.dtype).itemsize
    x_tile_bytes = TB * SEQ * HID * itemsize
    tmp_bytes = TB * GROUP * HID * 4 * 2          # group product + f32 cast
    resident_bytes = (SEQ * HID + HID * OUT + OUT + TB * OUT) * 4
    vmem_limit = int(min(int(0.75 * vmem_cap),
                         max(16 << 20,
                             2 * x_tile_bytes + tmp_bytes
                             + resident_bytes + (4 << 20))))

    out = pl.pallas_call(
        classifier_kernel,
        out_shape=jax.ShapeDtypeStruct((B, OUT), jnp.float32),
        grid=grid,
        in_specs=[
            # Batch-tiled input: pipelined HBM->VMEM DMA (the kernel is
            # HBM-bandwidth bound, so this is the main lever).
            pl.BlockSpec((TB, SEQ, HID), lambda i: (i, 0, 0)),
            # Constant index_map -> weights/biases stay resident across steps.
            pl.BlockSpec((SEQ, HID), lambda i: (0, 0)),
            pl.BlockSpec(memory_space=pltpu.MemorySpace.SMEM),   # b1 scalar
            pl.BlockSpec((HID, OUT), lambda i: (0, 0)),
            pl.BlockSpec((1, OUT), lambda i: (0, 0)),
        ],
        out_specs=pl.BlockSpec((TB, OUT), lambda i: (i, 0)),
        compiler_params=pltpu.CompilerParams(
            # Batch tiles are independent -> shard across v7x's 2 TensorCores.
            dimension_semantics=("parallel",),
            vmem_limit_bytes=vmem_limit,
        ),
    )(embeds, w1_b, b1_s, w2_t, b2_r)

    # Match torch.squeeze semantics (drops the batch dim when B == 1).
    return jnp.squeeze(out)


def reference_forward(embeds, w1, b1, w2, b2):
    # Pure-JAX reference mirroring the PyTorch module.
    all_embeds = jnp.swapaxes(embeds, 1, 2)                                 # (B, D, S)
    feats = jnp.einsum("bds,os->bdo", all_embeds, w1.reshape(1, SEQ)) + b1  # (B, D, 1)
    feats = jnp.swapaxes(feats, 1, 2)                                       # (B, 1, D)
    feats = jnp.maximum(feats, 0.0)
    out = jnp.einsum("bnd,kd->bnk", feats, w2) + b2                         # (B, 1, OUT)
    return jnp.squeeze(out)


if __name__ == "__main__":
    key = jax.random.PRNGKey(0)
    k_x, k_w1, k_b1, k_w2, k_b2 = jax.random.split(key, 5)

    # Deterministic parameters (PyTorch-like uniform ranges).
    bound1 = 1.0 / (SEQ ** 0.5)
    w1 = jax.random.uniform(k_w1, (1, SEQ), jnp.float32, -bound1, bound1)    # dense1.weight
    b1 = jax.random.uniform(k_b1, (1,), jnp.float32, -bound1, bound1)        # dense1.bias
    bound2 = 1.0 / (HID ** 0.5)
    w2 = jax.random.uniform(k_w2, (OUT, HID), jnp.float32, -bound2, bound2)  # dense2.weight
    b2 = jax.random.uniform(k_b2, (OUT,), jnp.float32, -bound2, bound2)      # dense2.bias

    # Case 1: tiny batch, single grid step, full-array blocks.
    B = 2
    embeds = jax.random.normal(k_x, (B, SEQ, HID), dtype=jnp.float32)
    out = jax.block_until_ready(classifier_forward(embeds, w1, b1, w2, b2))
    ref = reference_forward(embeds, w1, b1, w2, b2)
    assert out.shape == (B, OUT), out.shape
    assert jnp.allclose(out, ref, atol=1e-4, rtol=1e-4), "mismatch vs reference (B=2)"

    # Case 2: exercise the small-batch split (>=2 grid steps, partial last block).
    B2 = 12
    embeds2 = jax.random.normal(k_x, (B2, SEQ, HID), dtype=jnp.float32)
    out2 = jax.block_until_ready(classifier_forward(embeds2, w1, b1, w2, b2))
    ref2 = reference_forward(embeds2, w1, b1, w2, b2)
    assert out2.shape == (B2, OUT), out2.shape
    assert jnp.allclose(out2, ref2, atol=1e-4, rtol=1e-4), "mismatch vs reference (B=12)"

    # Case 3: bf16 input path (upstream producer supplies bf16; kernel
    # upcasts and accumulates in f32).
    embeds_bf16 = embeds2.astype(jnp.bfloat16)
    out3 = jax.block_until_ready(classifier_forward(embeds_bf16, w1, b1, w2, b2))
    ref3 = reference_forward(embeds_bf16.astype(jnp.float32), w1, b1, w2, b2)
    assert jnp.allclose(out3, ref3, atol=5e-2, rtol=5e-2), "mismatch vs reference (bf16)"

    # Note: torch.squeeze would give shape (20,) when B == 1; handled by
    # jnp.squeeze in the wrapper.
    print("KERNEL_OK")
</pallas_src>

<mosaic_0001>
module attributes {stable_mosaic.version = 11 : i64} {
  func.func @classifier_kernel(%arg0: i32, %arg1: memref<2x30x768xf32, #tpu.memory_space<vmem>>, %arg2: memref<30x768xf32, #tpu.memory_space<vmem>>, %arg3: memref<1x1xf32, #tpu.memory_space<smem>>, %arg4: memref<768x20xf32, #tpu.memory_space<vmem>>, %arg5: memref<1x20xf32, #tpu.memory_space<vmem>>, %arg6: memref<2x20xf32, #tpu.memory_space<vmem>>) attributes {dimension_semantics = [#tpu.dimension_semantics<parallel>], iteration_bounds = array<i64: 1>, scalar_prefetch = 0 : i64, scratch_operands = 0 : i64, tpu.core_type = #tpu.core_type<tc>, window_params = [{transform_indices = @transform_0, window_bounds = array<i64: 2, 30, 768>}, {pipeline_mode = #tpu.pipeline_mode<synchronous>, transform_indices = @transform_1, window_bounds = array<i64: 30, 768>}, {transform_indices = @transform_2, window_bounds = array<i64: 1, 1>}, {pipeline_mode = #tpu.pipeline_mode<synchronous>, transform_indices = @transform_3, window_bounds = array<i64: 768, 20>}, {pipeline_mode = #tpu.pipeline_mode<synchronous>, transform_indices = @transform_4, window_bounds = array<i64: 1, 20>}, {transform_indices = @transform_5, window_bounds = array<i64: 2, 20>}]} {
    %c0 = arith.constant 0 : index
    %c0_0 = arith.constant 0 : index
    %0 = memref.load %arg3[%c0, %c0_0] : memref<1x1xf32, #tpu.memory_space<smem>>
    %cst = arith.constant 0.000000e+00 : f32
    %1 = vector.broadcast %cst : f32 to vector<2x768xf32>
    %c0_1 = arith.constant 0 : index
    %c0_2 = arith.constant 0 : index
    %c0_3 = arith.constant 0 : index
    %2 = vector.load %arg1[%c0_1, %c0_2, %c0_3] : memref<2x30x768xf32, #tpu.memory_space<vmem>>, vector<2x8x768xf32>
    %c0_4 = arith.constant 0 : index
    %c0_5 = arith.constant 0 : index
    %3 = vector.load %arg2[%c0_4, %c0_5] : memref<30x768xf32, #tpu.memory_space<vmem>>, vector<8x768xf32>
    %4 = vector.shape_cast %3 : vector<8x768xf32> to vector<1x8x768xf32>
    %5 = vector.broadcast %4 : vector<1x8x768xf32> to vector<2x8x768xf32>
    %6 = arith.mulf %2, %5 : vector<2x8x768xf32>
    %cst_6 = arith.constant dense<0.000000e+00> : vector<2x768xf32>
    %7 = vector.multi_reduction <add>, %6, %cst_6 [1] : vector<2x8x768xf32> to vector<2x768xf32>
    %8 = arith.addf %1, %7 : vector<2x768xf32>
    %c0_7 = arith.constant 0 : index
    %c8 = arith.constant 8 : index
    %c0_8 = arith.constant 0 : index
    %9 = vector.load %arg1[%c0_7, %c8, %c0_8] : memref<2x30x768xf32, #tpu.memory_space<vmem>>, vector<2x8x768xf32>
    %c8_9 = arith.constant 8 : index
    %c0_10 = arith.constant 0 : index
    %10 = vector.load %arg2[%c8_9, %c0_10] : memref<30x768xf32, #tpu.memory_space<vmem>>, vector<8x768xf32>
    %11 = vector.shape_cast %10 : vector<8x768xf32> to vector<1x8x768xf32>
    %12 = vector.broadcast %11 : vector<1x8x768xf32> to vector<2x8x768xf32>
    %13 = arith.mulf %9, %12 : vector<2x8x768xf32>
    %cst_11 = arith.constant dense<0.000000e+00> : vector<2x768xf32>
    %14 = vector.multi_reduction <add>, %13, %cst_11 [1] : vector<2x8x768xf32> to vector<2x768xf32>
    %15 = arith.addf %8, %14 : vector<2x768xf32>
    %c0_12 = arith.constant 0 : index
    %c16 = arith.constant 16 : index
    %c0_13 = arith.constant 0 : index
    %16 = vector.load %arg1[%c0_12, %c16, %c0_13] : memref<2x30x768xf32, #tpu.memory_space<vmem>>, vector<2x8x768xf32>
    %c16_14 = arith.constant 16 : index
    %c0_15 = arith.constant 0 : index
    %17 = vector.load %arg2[%c16_14, %c0_15] : memref<30x768xf32, #tpu.memory_space<vmem>>, vector<8x768xf32>
    %18 = vector.shape_cast %17 : vector<8x768xf32> to vector<1x8x768xf32>
    %19 = vector.broadcast %18 : vector<1x8x768xf32> to vector<2x8x768xf32>
    %20 = arith.mulf %16, %19 : vector<2x8x768xf32>
    %cst_16 = arith.constant dense<0.000000e+00> : vector<2x768xf32>
    %21 = vector.multi_reduction <add>, %20, %cst_16 [1] : vector<2x8x768xf32> to vector<2x768xf32>
    %22 = arith.addf %15, %21 : vector<2x768xf32>
    %c0_17 = arith.constant 0 : index
    %c24 = arith.constant 24 : index
    %c0_18 = arith.constant 0 : index
    %23 = vector.load %arg1[%c0_17, %c24, %c0_18] : memref<2x30x768xf32, #tpu.memory_space<vmem>>, vector<2x6x768xf32>
    %c24_19 = arith.constant 24 : index
    %c0_20 = arith.constant 0 : index
    %24 = vector.load %arg2[%c24_19, %c0_20] : memref<30x768xf32, #tpu.memory_space<vmem>>, vector<6x768xf32>
    %25 = vector.shape_cast %24 : vector<6x768xf32> to vector<1x6x768xf32>
    %26 = vector.broadcast %25 : vector<1x6x768xf32> to vector<2x6x768xf32>
    %27 = arith.mulf %23, %26 : vector<2x6x768xf32>
    %cst_21 = arith.constant dense<0.000000e+00> : vector<2x768xf32>
    %28 = vector.multi_reduction <add>, %27, %cst_21 [1] : vector<2x6x768xf32> to vector<2x768xf32>
    %29 = arith.addf %22, %28 : vector<2x768xf32>
    %30 = vector.broadcast %0 : f32 to vector<2x768xf32>
    %31 = arith.addf %29, %30 : vector<2x768xf32>
    %cst_22 = arith.constant 0.000000e+00 : f32
    %32 = vector.broadcast %cst_22 : f32 to vector<2x768xf32>
    %33 = arith.maximumf %31, %32 : vector<2x768xf32>
    %c0_23 = arith.constant 0 : index
    %c0_24 = arith.constant 0 : index
    %34 = vector.load %arg4[%c0_23, %c0_24] : memref<768x20xf32, #tpu.memory_space<vmem>>, vector<768x20xf32>
    %cst_25 = arith.constant dense<0.000000e+00> : vector<2x20xf32>
    %35 = tpu.matmul %33, %34, %cst_25 {dimension_numbers = #tpu.dot_dimension_numbers<[1], [0], [0], [1], [0, 0, 1, 1], [], []>} : vector<2x768xf32>, vector<768x20xf32>, vector<2x20xf32> -> vector<2x20xf32>
    %c0_26 = arith.constant 0 : index
    %c0_27 = arith.constant 0 : index
    %36 = vector.load %arg5[%c0_26, %c0_27] : memref<1x20xf32, #tpu.memory_space<vmem>>, vector<1x20xf32>
    %37 = vector.broadcast %36 : vector<1x20xf32> to vector<2x20xf32>
    %38 = arith.addf %35, %37 : vector<2x20xf32>
    %c0_28 = arith.constant 0 : index
    %c0_29 = arith.constant 0 : index
    %39 = vector.load %arg6[%c0_28, %c0_29] : memref<2x20xf32, #tpu.memory_space<vmem>>, vector<2x20xf32>
    tpu.vector_store %arg6[%c0_28, %c0_29], %38 {strides = array<i32>} : memref<2x20xf32, #tpu.memory_space<vmem>>, vector<2x20xf32>,
    return
  }
  func.func @transform_0(%arg0: i32) -> (i32, i32, i32) {
    %c0_i32 = arith.constant 0 : i32
    %c0_i32_0 = arith.constant 0 : i32
    %c0_i32_1 = arith.constant 0 : i32
    return %arg0, %c0_i32, %c0_i32_0 : i32, i32, i32
  }
  func.func @transform_1(%arg0: i32) -> (i32, i32) {
    %c0_i32 = arith.constant 0 : i32
    %c0_i32_0 = arith.constant 0 : i32
    %c0_i32_1 = arith.constant 0 : i32
    return %c0_i32, %c0_i32_0 : i32, i32
  }
  func.func @transform_2(%arg0: i32) -> (i32, i32) {
    %c0_i32 = arith.constant 0 : i32
    %c0_i32_0 = arith.constant 0 : i32
    %c0_i32_1 = arith.constant 0 : i32
    return %c0_i32, %c0_i32_0 : i32, i32
  }
  func.func @transform_3(%arg0: i32) -> (i32, i32) {
    %c0_i32 = arith.constant 0 : i32
    %c0_i32_0 = arith.constant 0 : i32
    %c0_i32_1 = arith.constant 0 : i32
    return %c0_i32, %c0_i32_0 : i32, i32
  }
  func.func @transform_4(%arg0: i32) -> (i32, i32) {
    %c0_i32 = arith.constant 0 : i32
    %c0_i32_0 = arith.constant 0 : i32
    %c0_i32_1 = arith.constant 0 : i32
    return %c0_i32, %c0_i32_0 : i32, i32
  }
  func.func @transform_5(%arg0: i32) -> (i32, i32) {
    %c0_i32 = arith.constant 0 : i32
    %c0_i32_0 = arith.constant 0 : i32
    return %arg0, %c0_i32 : i32, i32
  }
}

</mosaic_0001>

<bundles_post_ra>
// kernel: tpu_custom_call.1
= control target key start
LH: loop header
LB: loop body
LE: loop exit
PB: predicated region body
PF: predicated region fallthrough
CT: control target
= control target key end

     0   :  { %vm395_vm0 = vcmask 1045504   ;;  %s1384_s0 = inlined_call_operand.vmem [shape: f32[2,30,768], index: 0, kind: input, shape index: {}]   ;;  %s1385_s1 = inlined_call_operand.vmem [shape: f32[30,768], index: 1, kind: input, shape index: {}]   ;;  %s1386_s2 = inlined_call_operand.<no memory space> [shape: f32[1,1], index: 2, kind: input, shape index: {}]   ;;  %s1387_s3 = inlined_call_operand.vmem [shape: f32[768,20], index: 3, kind: input, shape index: {}]   ;;  %s1388_s4 = inlined_call_operand.vmem [shape: f32[1,20], index: 4, kind: input, shape index: {}]   ;;  %s1389_s5 = inlined_call_operand.hbm [shape: f32[2,20], index: 5, kind: output, shape index: {}]  }
   0x1   :  { %v532_v0 = vld [vmem:[%s1387_s3 + $0x78] sm:$0xff]  ;;  %v531_v1 = vld [vmem:[%s1387_s3 + $0x70] sm:$0xff]  ;;  %v530_v4 = vld [vmem:[%s1387_s3 + $0x68] sm:$0xff] }
   0x2   :  { %v548_v2 = vld [vmem:[%s1387_s3 + $0xf8] sm:$0xff]  ;;  %642 = vmatpush.msra.mxu0 %v532_v0  ;;  %v547_v3 = vld [vmem:[%s1387_s3 + $0xf0] sm:$0xff]  ;;  %v546_v5 = vld [vmem:[%s1387_s3 + $0xe8] sm:$0xff] }
   0x3   :  { %662 = vmatpush.msra.mxu1 %v548_v2  ;;  %v529_v6 = vld [vmem:[%s1387_s3 + $0x60] sm:$0xff]  ;;  %v528_v8 = vld [vmem:[%s1387_s3 + $0x58] sm:$0xff]  ;;  %v527_v10 = vld [vmem:[%s1387_s3 + $0x50] sm:$0xff] }
   0x4   :  { %643 = vmatpush.msra.mxu0 %v531_v1  ;;  %v545_v7 = vld [vmem:[%s1387_s3 + $0xe0] sm:$0xff]  ;;  %v544_v9 = vld [vmem:[%s1387_s3 + $0xd8] sm:$0xff]  ;;  %v543_v12 = vld [vmem:[%s1387_s3 + $0xd0] sm:$0xff] }
   0x5   :  { %663 = vmatpush.msra.mxu1 %v547_v3  ;;  %v564_v11 = vld [vmem:[%s1387_s3 + $0x178] sm:$0xff]  ;;  %v563_v13 = vld [vmem:[%s1387_s3 + $0x170] sm:$0xff]  ;;  %v562_v15 = vld [vmem:[%s1387_s3 + $0x168] sm:$0xff] }
   0x6   :  { %644 = vmatpush.msra.mxu0 %v530_v4  ;;  %682 = vmatpush.msra.mxu2 %v564_v11  ;;  %v580_v14 = vld [vmem:[%s1387_s3 + $0x1f8] sm:$0xff]  ;;  %v579_v16 = vld [vmem:[%s1387_s3 + $0x1f0] sm:$0xff]  ;;  %v526_v17 = vld [vmem:[%s1387_s3 + $0x48] sm:$0xff] }
   0x7   :  { %664 = vmatpush.msra.mxu1 %v546_v5  ;;  %v542_v18 = vld [vmem:[%s1387_s3 + $0xc8] sm:$0xff]  ;;  %702 = vmatpush.msra.mxu3 %v580_v14  ;;  %v561_v19 = vld [vmem:[%s1387_s3 + $0x160] sm:$0xff]  ;;  %v560_v23 = vld [vmem:[%s1387_s3 + $0x158] sm:$0xff] }
   0x8   :  { %645 = vmatpush.msra.mxu0 %v529_v6  ;;  %683 = vmatpush.msra.mxu2 %v563_v13  ;;  %v578_v20 = vld [vmem:[%s1387_s3 + $0x1e8] sm:$0xff]  ;;  %v525_v21 = vld [vmem:[%s1387_s3 + $0x40] sm:$0xff]  ;;  %v524_v25 = vld [vmem:[%s1387_s3 + $0x38] sm:$0xff] }
   0x9   :  { %665 = vmatpush.msra.mxu1 %v545_v7  ;;  %v541_v22 = vld [vmem:[%s1387_s3 + $0xc0] sm:$0xff]  ;;  %703 = vmatpush.msra.mxu3 %v579_v16  ;;  %v540_v26 = vld [vmem:[%s1387_s3 + $0xb8] sm:$0xff]  ;;  %v559_v27 = vld [vmem:[%s1387_s3 + $0x150] sm:$0xff] }
   0xa   :  { %646 = vmatpush.msra.mxu0 %v528_v8  ;;  %684 = vmatpush.msra.mxu2 %v562_v15  ;;  %v577_v24 = vld [vmem:[%s1387_s3 + $0x1e0] sm:$0xff]  ;;  %v576_v28 = vld [vmem:[%s1387_s3 + $0x1d8] sm:$0xff]  ;;  %v523_v29 = vld [vmem:[%s1387_s3 + $0x30] sm:$0xff] }
   0xb   :  { %666 = vmatpush.msra.mxu1 %v544_v9  ;;  %704 = vmatpush.msra.mxu3 %v578_v20  ;;  %v539_v30 = vld [vmem:[%s1387_s3 + $0xb0] sm:$0xff]  ;;  %v558_v31 = vld [vmem:[%s1387_s3 + $0x148] sm:$0xff]  ;;  %v557_v35 = vld [vmem:[%s1387_s3 + $0x140] sm:$0xff] }
   0xc   :  { %647 = vmatpush.msra.mxu0 %v527_v10  ;;  %685 = vmatpush.msra.mxu2 %v561_v19  ;;  %v575_v32 = vld [vmem:[%s1387_s3 + $0x1d0] sm:$0xff]  ;;  %v522_v33 = vld [vmem:[%s1387_s3 + $0x28] sm:$0xff]  ;;  %v521_v37 = vld [vmem:[%s1387_s3 + $0x20] sm:$0xff] }
   0xd   :  { %667 = vmatpush.msra.mxu1 %v543_v12  ;;  %705 = vmatpush.msra.mxu3 %v577_v24  ;;  %v538_v34 = vld [vmem:[%s1387_s3 + $0xa8] sm:$0xff]  ;;  %v537_v38 = vld [vmem:[%s1387_s3 + $0xa0] sm:$0xff]  ;;  %v556_v39 = vld [vmem:[%s1387_s3 + $0x138] sm:$0xff] }
   0xe   :  { %648 = vmatpush.msra.mxu0 %v526_v17  ;;  %686 = vmatpush.msra.mxu2 %v560_v23  ;;  %v574_v36 = vld [vmem:[%s1387_s3 + $0x1c8] sm:$0xff]  ;;  %v573_v40 = vld [vmem:[%s1387_s3 + $0x1c0] sm:$0xff]  ;;  %v520_v41 = vld [vmem:[%s1387_s3 + $0x18] sm:$0xff] }
   0xf   :  { %668 = vmatpush.msra.mxu1 %v542_v18  ;;  %706 = vmatpush.msra.mxu3 %v576_v28  ;;  %v536_v42 = vld [vmem:[%s1387_s3 + $0x98] sm:$0xff]  ;;  %v555_v43 = vld [vmem:[%s1387_s3 + $0x130] sm:$0xff]  ;;  %v518_v47 = vld [vmem:[%s1387_s3 + $0x8] sm:$0xff] }
  0x10   :  { %649 = vmatpush.msra.mxu0 %v525_v21  ;;  %687 = vmatpush.msra.mxu2 %v559_v27  ;;  %v572_v44 = vld [vmem:[%s1387_s3 + $0x1b8] sm:$0xff]  ;;  %v519_v45 = vld [vmem:[%s1387_s3 + $0x10] sm:$0xff]  ;;  %v554_v48 = vld [vmem:[%s1387_s3 + $0x128] sm:$0xff] }
  0x11   :  { %669 = vmatpush.msra.mxu1 %v541_v22  ;;  %707 = vmatpush.msra.mxu3 %v575_v32  ;;  %v535_v46 = vld [vmem:[%s1387_s3 + $0x90] sm:$0xff]  ;;  %v517_v50 = vld [vmem:[%s1387_s3] sm:$0xff]  ;;  %v534_v51 = vld [vmem:[%s1387_s3 + $0x88] sm:$0xff]  ;;  %v1079_v32 = vstv %s1386_s2 }
  0x12   :  { %650 = vmatpush.msra.mxu0 %v524_v25  ;;  %688 = vmatpush.msra.mxu2 %v558_v31  ;;  %v571_v49 = vld [vmem:[%s1387_s3 + $0x1b0] sm:$0xff]  ;;  %v533_v52 = vld [vmem:[%s1387_s3 + $0x80] sm:$0xff]  ;;  %v596_v53 = vld [vmem:[%s1387_s3 + $0x278] sm:$0xff] }
  0x13   :  { %670 = vmatpush.msra.mxu1 %v540_v26  ;;  %708 = vmatpush.msra.mxu3 %v574_v36  ;;  %v612_v54 = vld [vmem:[%s1387_s3 + $0x2f8] sm:$0xff]  ;;  %v553_v55 = vld [vmem:[%s1387_s3 + $0x120] sm:$0xff]  ;;  %v570_v56 = vld [vmem:[%s1387_s3 + $0x1a8] sm:$0xff] }
  0x14   :  { %651 = vmatpush.msra.mxu0 %v523_v29  ;;  %689 = vmatpush.msra.mxu2 %v557_v35  ;;  %v552_v57 = vld [vmem:[%s1387_s3 + $0x118] sm:$0xff]  ;;  %v569_v58 = vld [vmem:[%s1387_s3 + $0x1a0] sm:$0xff]  ;;  %v25_v59 = vld [vmem:[%s1384_s0 + $0x10] sm:$0xff] }
  0x15   :  { %671 = vmatpush.msra.mxu1 %v539_v30  ;;  %709 = vmatpush.msra.mxu3 %v573_v40  ;;  %v31_v60 = vld [vmem:[%s1384_s0 + $0xd0] sm:$0xff]  ;;  %v139_v0 = vld [vmem:[%s1384_s0 + $0x40] sm:$0xff]  ;;  %v568_v16 = vld [vmem:[%s1387_s3 + $0x198] sm:$0xff] }
  0x16   :  { %652 = vmatpush.msra.mxu0 %v522_v33  ;;  %690 = vmatpush.msra.mxu2 %v556_v39  ;;  %v37_v61 = vld [vmem:[%s1385_s1 + $0x10] sm:$0xff]  ;;  %v145_v1 = vld [vmem:[%s1384_s0 + $0x100] sm:$0xff]  ;;  %v594_v20 = vld [vmem:[%s1387_s3 + $0x268] sm:$0xff] }
  0x17   :  { %672 = vmatpush.msra.mxu1 %v538_v34  ;;  %710 = vmatpush.msra.mxu3 %v572_v44  ;;  %v43_v62 = vmul.f32 %v37_v61, %v25_v59  ;;  %v49_v63 = vmul.f32 %v37_v61, %v31_v60  ;;  %v151_v2 = vld [vmem:[%s1385_s1 + $0x40] sm:$0xff]  ;;  %v253_v5 = vld [vmem:[%s1384_s0 + $0x70] sm:$0xff]  ;;  %v610_v21 = vld [vmem:[%s1387_s3 + $0x2e8] sm:$0xff] }
  0x18   :  { %653 = vmatpush.msra.mxu0 %v521_v37  ;;  %691 = vmatpush.msra.mxu2 %v555_v43  ;;  %v157_v3 = vmul.f32 %v151_v2, %v139_v0  ;;  %v163_v4 = vmul.f32 %v151_v2, %v145_v1  ;;  %v259_v6 = vld [vmem:[%s1384_s0 + $0x130] sm:$0xff]  ;;  %v367_v14 = vld [vmem:[%s1384_s0 + $0xa0] sm:$0x3f]  ;;  %v550_v27 = vld [vmem:[%s1387_s3 + $0x108] sm:$0xff] }
  0x19   :  { %673 = vmatpush.msra.mxu1 %v537_v38  ;;  %711 = vmatpush.msra.mxu3 %v571_v49  ;;  %v265_v7 = vld [vmem:[%s1385_s1 + $0x70] sm:$0xff]  ;;  %v65_v10 = vrot.slane %v43_v62, 4  ;;  %v101_v11 = vrot.slane %v49_v63, 4  ;;  %v379_v19 = vld [vmem:[%s1385_s1 + $0xa0] sm:$0x3f]  ;;  %v566_v40 = vld [vmem:[%s1387_s3 + $0x188] sm:$0xff] }
  0x1a   :  { %654 = vmatpush.msra.mxu0 %v520_v41  ;;  %692 = vmatpush.msra.mxu2 %v554_v48  ;;  %v595_v8 = vld [vmem:[%s1387_s3 + $0x270] sm:$0xff]  ;;  %v271_v12 = vmul.f32 %v265_v7, %v253_v5  ;;  %v277_v13 = vmul.f32 %v265_v7, %v259_v6  ;;  %v179_v17 = vrot.slane %v157_v3, 4  ;;  %v215_v18 = vrot.slane %v163_v4, 4  ;;  %v373_v26 = vld [vmem:[%s1384_s0 + $0x160] sm:$0x3f]  ;;  %v590_v5 = vld [vmem:[%s1387_s3 + $0x248] sm:$0xff] }
  0x1b   :  { %674 = vmatpush.msra.mxu1 %v536_v42  ;;  %712 = vmatpush.msra.mxu3 %v570_v56  ;;  %v611_v9 = vld [vmem:[%s1387_s3 + $0x2f0] sm:$0xff]  ;;  %v66_v22 = vadd.f32 %v65_v10, %v43_v62  ;;  %v102_v23 = vadd.f32 %v101_v11, %v49_v63  ;;  %v385_v31 = vmul.f32 %v379_v19, %v367_v14  ;;  %v593_v33 = vld [vmem:[%s1387_s3 + $0x260] sm:$0xff]  ;;  %v606_v7 = vld [vmem:[%s1387_s3 + $0x2c8] sm:$0xff] }
  0x1c   :  { %655 = vmatpush.msra.mxu0 %v519_v45  ;;  %693 = vmatpush.msra.mxu2 %v553_v55  ;;  %v551_v15 = vld [vmem:[%s1387_s3 + $0x110] sm:$0xff]  ;;  %v293_v24 = vrot.slane %v271_v12, 4  ;;  %v329_v25 = vrot.slane %v277_v13, 4  ;;  %v180_v29 = vadd.f32 %v179_v17, %v157_v3  ;;  %v216_v30 = vadd.f32 %v215_v18, %v163_v4  ;;  %v609_v34 = vld [vmem:[%s1387_s3 + $0x2e0] sm:$0xff]  ;;  %v592_v45 = vld [vmem:[%s1387_s3 + $0x258] sm:$0xff] }
  0x1d   :  { %675 = vmatpush.msra.mxu1 %v535_v46  ;;  %713 = vmatpush.msra.mxu3 %v569_v58  ;;  %v567_v28 = vld [vmem:[%s1387_s3 + $0x190] sm:$0xff]  ;;  %v67_v35 = vrot.slane %v66_v22, 2  ;;  %v103_v36 = vrot.slane %v102_v23, 2  ;;  %v549_v39 = vld [vmem:[%s1387_s3 + $0x100] sm:$0xff]  ;;  %v391_v43 = vmul.f32 %v379_v19, %v373_v26  ;;  %v410_v44 = vsel %vm395_vm0, %v385_v31, 0.0  ;;  %v608_v46 = vld [vmem:[%s1387_s3 + $0x2d8] sm:$0xff] }
  0x1e   :  { %656 = vmatpush.msra.mxu0 %v518_v47  ;;  %694 = vmatpush.msra.mxu2 %v552_v57  ;;  %v294_v37 = vadd.f32 %v293_v24, %v271_v12  ;;  %v330_v38 = vadd.f32 %v329_v25, %v277_v13  ;;  %v181_v41 = vrot.slane %v180_v29, 2  ;;  %v217_v42 = vrot.slane %v216_v30, 2  ;;  %v565_v55 = vld [vmem:[%s1387_s3 + $0x180] sm:$0xff]  ;;  %v591_v56 = vld [vmem:[%s1387_s3 + $0x250] sm:$0xff] }
  0x1f   :  { %676 = vmatpush.msra.mxu1 %v534_v51  ;;  %714 = vmatpush.msra.mxu3 %v568_v16  ;;  %v68_v47 = vadd.f32 %v67_v35, %v66_v22  ;;  %v104_v48 = vadd.f32 %v103_v36, %v102_v23  ;;  %v607_v57 = vld [vmem:[%s1387_s3 + $0x2d0] sm:$0xff]  ;;  %v23_v2 = vld [vmem:[%s1384_s0] sm:$0xff] }
  0x20   :  { %657 = vmatpush.msra.mxu0 %v517_v50  ;;  %695 = vmatpush.msra.mxu2 %v551_v15  ;;  %v295_v49 = vrot.slane %v294_v37, 2  ;;  %v331_v50 = vrot.slane %v330_v38, 2  ;;  %v182_v51 = vadd.f32 %v181_v41, %v180_v29  ;;  %v29_v3 = vld [vmem:[%s1384_s0 + $0xc0] sm:$0xff]  ;;  %v137_v16 = vld [vmem:[%s1384_s0 + $0x30] sm:$0xff] }
  0x21   :  { %677 = vmatpush.msra.mxu1 %v533_v52  ;;  %715 = vmatpush.msra.mxu3 %v567_v28  ;;  %v218_v52 = vadd.f32 %v217_v42, %v216_v30  ;;  %v69_v58 = vrot.slane %v68_v47, 1  ;;  %v105_v59 = vrot.slane %v104_v48, 1  ;;  %v35_v4 = vld [vmem:[%s1385_s1] sm:$0xff]  ;;  %v143_v17 = vld [vmem:[%s1384_s0 + $0xf0] sm:$0xff] }
  0x22   :  { %722 = vmatpush.msrb.mxu0 %v596_v53  ;;  %696 = vmatpush.msra.mxu2 %v550_v27  ;;  %v411_v53 = vrot.slane %v410_v44, 4  ;;  %v296_v60 = vadd.f32 %v295_v49, %v294_v37  ;;  %v332_v61 = vadd.f32 %v331_v50, %v330_v38  ;;  %v183_v62 = vrot.slane %v182_v51, 1  ;;  %v589_v6 = vld [vmem:[%s1387_s3 + $0x240] sm:$0xff]  ;;  %v149_v18 = vld [vmem:[%s1385_s1 + $0x30] sm:$0xff] }
  0x23   :  { %742 = vmatpush.msrb.mxu1 %v612_v54  ;;  %v452_v54 = vsel %vm395_vm0, %v391_v43, 0.0  ;;  %716 = vmatpush.msra.mxu3 %v566_v40  ;;  %v219_v63 = vrot.slane %v218_v52, 1  ;;  %v605_v19 = vld [vmem:[%s1387_s3 + $0x2c0] sm:$0xff]  ;;  %v41_v22 = vmul.f32 %v35_v4, %v23_v2  ;;  %v47_v23 = vmul.f32 %v35_v4, %v29_v3 }
  0x24   :  { %723 = vmatpush.msrb.mxu0 %v595_v8  ;;  %697 = vmatpush.msra.mxu2 %v549_v39  ;;  %v412_v0 = vadd.f32 %v411_v53, %v410_v44  ;;  %v453_v1 = vrot.slane %v452_v54, 4  ;;  %v70_v8 = vadd.f32 %v69_v58, %v68_v47  ;;  %v297_v10 = vrot.slane %v296_v60, 1 }
  0x25   :  { %743 = vmatpush.msrb.mxu1 %v611_v9  ;;  %v106_v9 = vadd.f32 %v105_v59, %v104_v48  ;;  %v333_v11 = vrot.slane %v332_v61, 1  ;;  %717 = vmatpush.msra.mxu3 %v565_v55  ;;  %v184_v12 = vadd.f32 %v183_v62, %v182_v51  ;;  %v220_v13 = vadd.f32 %v219_v63, %v218_v52 }
  0x26   :  { %724 = vmatpush.msrb.mxu0 %v594_v20  ;;  %v413_v14 = vrot.slane %v412_v0, 2  ;;  %v454_v15 = vadd.f32 %v453_v1, %v452_v54  ;;  %v298_v20 = vadd.f32 %v297_v10, %v296_v60 }
  0x27   :  { %744 = vmatpush.msrb.mxu1 %v610_v21  ;;  %v334_v21 = vadd.f32 %v333_v11, %v332_v61 }
  0x28   :  { %725 = vmatpush.msrb.mxu0 %v593_v33 }
  0x29   :  { %745 = vmatpush.msrb.mxu1 %v609_v34 }
  0x2a   :  { %726 = vmatpush.msrb.mxu0 %v592_v45 }
  0x2b   :  { %746 = vmatpush.msrb.mxu1 %v608_v46 }
  0x2c   :  { %727 = vmatpush.msrb.mxu0 %v591_v56 }
  0x2d   :  { %747 = vmatpush.msrb.mxu1 %v607_v57 }
  0x2e   :  { %11 = vsyncpa [#allocation4], 0  ;;  %728 = vmatpush.msrb.mxu0 %v590_v5  ;;  %v588_v24 = vld [vmem:[%s1387_s3 + $0x238] sm:$0xff]  ;;  %v241_v26 = vadd.f32 %v184_v12, %v70_v8  ;;  %v247_v27 = vadd.f32 %v220_v13, %v106_v9  ;;  %v414_v28 = vadd.f32 %v413_v14, %v412_v0  ;;  %v455_v29 = vrot.slane %v454_v15, 2  ;;  %v251_v35 = vld [vmem:[%s1384_s0 + $0x60] sm:$0xff]  ;;  %s808_s22 = smov [#allocation3]  }
  0x2f   :  { %748 = vmatpush.msrb.mxu1 %v606_v7  ;;  %v604_v25 = vld [vmem:[%s1387_s3 + $0x2b8] sm:$0xff]  ;;  %v53_v30 = vrot.slane %v41_v22, 4  ;;  %v89_v31 = vrot.slane %v47_v23, 4  ;;  %v155_v33 = vmul.f32 %v149_v18, %v137_v16  ;;  %v161_v34 = vmul.f32 %v149_v18, %v143_v17  ;;  %v257_v36 = vld [vmem:[%s1384_s0 + $0x120] sm:$0xff]  ;;  %v587_v42 = vld [vmem:[%s1387_s3 + $0x230] sm:$0xff]  ;;  %s769_s23 = sshll.u32 %s808_s22, 4  ;;  %s770_s23 = int_to_ptr.vmem [resolvable:$true] %s769_s23 }
  0x30   :  { %v263_v37 = vld [vmem:[%s1385_s1 + $0x60] sm:$0xff]  ;;  %729 = vmatpush.msrb.mxu0 %v589_v6  ;;  %v355_v38 = vadd.f32 %v298_v20, %v241_v26  ;;  %v361_v39 = vadd.f32 %v334_v21, %v247_v27  ;;  %v415_v40 = vrot.slane %v414_v28, 1  ;;  %v456_v41 = vadd.f32 %v455_v29, %v454_v15  ;;  %v603_v43 = vld [vmem:[%s1387_s3 + $0x2b0] sm:$0xff]  ;;  %v586_v52 = vld [vmem:[%s1387_s3 + $0x228] sm:$0xff]  ;;  %s771_s26 = sshll.u32 %s1389_s5, 4  ;;  %s772_s26 = int_to_ptr.hbm [resolvable:$true] %s771_s26 }
  0x31   :  { %749 = vmatpush.msrb.mxu1 %v605_v19  ;;  %v54_v44 = vadd.f32 %v53_v30, %v41_v22  ;;  %v90_v45 = vadd.f32 %v89_v31, %v47_v23  ;;  %v167_v46 = vrot.slane %v155_v33, 4  ;;  %v203_v47 = vrot.slane %v161_v34, 4  ;;  %v602_v53 = vld [vmem:[%s1387_s3 + $0x2a8] sm:$0xff]  ;;  %v585_v62 = vld [vmem:[%s1387_s3 + $0x220] sm:$0xff]  ;;  %v365_v10 = vld [vmem:[%s1384_s0 + $0x90] sm:$0x3f] }
  0x32   :  { %730 = vmatpush.msrb.mxu0 %v588_v24  ;;  %v416_v48 = vadd.f32 %v415_v40, %v414_v28  ;;  %v457_v49 = vrot.slane %v456_v41, 1  ;;  %v269_v50 = vmul.f32 %v263_v37, %v251_v35  ;;  %v275_v51 = vmul.f32 %v263_v37, %v257_v36  ;;  %v377_v11 = vld [vmem:[%s1385_s1 + $0x90] sm:$0x3f]  ;;  %v26_v17 = vld [vmem:[%s1384_s0 + $0x18] sm:$0xff]  ;;  %v140_v37 = vld [vmem:[%s1384_s0 + $0x48] sm:$0xff] }
  0x33   :  { %750 = vmatpush.msrb.mxu1 %v604_v25  ;;  %v55_v54 = vrot.slane %v54_v44, 2  ;;  %v91_v55 = vrot.slane %v90_v45, 2  ;;  %v168_v56 = vadd.f32 %v167_v46, %v155_v33  ;;  %v204_v57 = vadd.f32 %v203_v47, %v161_v34  ;;  %v371_v16 = vld [vmem:[%s1384_s0 + $0x150] sm:$0x3f]  ;;  %v38_v18 = vld [vmem:[%s1385_s1 + $0x18] sm:$0xff] }
  0x34   :  { %731 = vmatpush.msrb.mxu0 %v587_v42  ;;  %v458_v58 = vadd.f32 %v457_v49, %v456_v41  ;;  %v482_v59 = vadd.f32 %v416_v48, %v355_v38  ;;  %v281_v60 = vrot.slane %v269_v50, 4  ;;  %v317_v61 = vrot.slane %v275_v51, 4  ;;  %v32_v30 = vld [vmem:[%s1384_s0 + $0xd8] sm:$0xff]  ;;  %v146_v38 = vld [vmem:[%s1384_s0 + $0x108] sm:$0xff] }
  0x35   :  { %751 = vmatpush.msrb.mxu1 %v603_v43  ;;  %v56_v63 = vadd.f32 %v55_v54, %v54_v44  ;;  %v92_v0 = vadd.f32 %v91_v55, %v90_v45  ;;  %v169_v1 = vrot.slane %v168_v56, 2  ;;  %v205_v2 = vrot.slane %v204_v57, 2 }
  0x36   :  { %732 = vmatpush.msrb.mxu0 %v586_v52  ;;  %v488_v3 = vadd.f32 %v458_v58, %v361_v39  ;;  %v495_v4 = vadd.f32 %v1079_v32, %v482_v59  ;;  %vm629_vm1 = vcmask 1041409   ;;  %v282_v5 = vadd.f32 %v281_v60, %v269_v50  ;;  %v152_v39 = vld [vmem:[%s1385_s1 + $0x48] sm:$0xff]  ;;  %v254_v52 = vld [vmem:[%s1384_s0 + $0x78] sm:$0xff] }
  0x37   :  { %752 = vmatpush.msrb.mxu1 %v602_v53  ;;  %v57_v6 = vrot.slane %v56_v63, 1  ;;  %v93_v7 = vrot.slane %v92_v0, 1  ;;  %v170_v8 = vadd.f32 %v169_v1, %v168_v56  ;;  %v206_v9 = vadd.f32 %v205_v2, %v204_v57  ;;  %v266_v53 = vld [vmem:[%s1385_s1 + $0x78] sm:$0xff] }
  0x38   :  { %v501_v12 = vadd.f32 %v1079_v32, %v488_v3  ;;  %v507_v13 = vmax.f32 %v495_v4, 0.0  ;;  %733 = vmatpush.msrb.mxu0 %v585_v62  ;;  %v283_v14 = vrot.slane %v282_v5, 2  ;;  %v318_v15 = vadd.f32 %v317_v61, %v275_v51  ;;  %v260_v62 = vld [vmem:[%s1384_s0 + $0x138] sm:$0xff] }
  0x39   :  { %v58_v19 = vadd.f32 %v57_v6, %v56_v63  ;;  %v94_v20 = vadd.f32 %v93_v7, %v92_v0  ;;  %v171_v21 = vrot.slane %v170_v8, 1  ;;  %v207_v22 = vrot.slane %v206_v9, 1 }
  0x3a   :  { %v513_v23 = vmax.f32 %v501_v12, 0.0  ;;  %v284_v24 = vadd.f32 %v283_v14, %v282_v5  ;;  %v319_v25 = vrot.slane %v318_v15, 2  ;;  %v383_v26 = vmul.f32 %v377_v11, %v365_v10  ;;  %v601_v12 = vld [vmem:[%s1387_s3 + $0x2a0] sm:$0xff] }
  0x3b   :  { %v172_v27 = vadd.f32 %v171_v21, %v170_v8  ;;  %v208_v28 = vadd.f32 %v207_v22, %v206_v9  ;;  %v389_v29 = vmul.f32 %v377_v11, %v371_v16  ;;  %v44_v31 = vmul.f32 %v38_v18, %v26_v17  ;;  %v584_v11 = vld [vmem:[%s1387_s3 + $0x218] sm:$0xff]  ;;  %753 = vmatpush.msrb.mxu1 %v601_v12 }
  0x3c   :  { %v632_v33 = vsel %vm629_vm1, %v513_v23, %v507_v13  ;;  %v285_v34 = vrot.slane %v284_v24, 1  ;;  %v320_v35 = vadd.f32 %v319_v25, %v318_v15  ;;  %v396_v36 = vsel %vm395_vm0, %v383_v26, 0.0  ;;  %734 = vmatpush.msrb.mxu0 %v584_v11 }
  0x3d   :  { %698 = vmatmul.f32.vlgmr.msra.gmra.mxu2 %v632_v33  ;;  %v239_v40 = vadd.f32 %v172_v27, %v58_v19  ;;  %v245_v41 = vadd.f32 %v208_v28, %v94_v20  ;;  %v397_v42 = vrot.slane %v396_v36, 4  ;;  %v438_v43 = vsel %vm395_vm0, %v389_v29, 0.0  ;;  %v368_v29 = vld [vmem:[%s1384_s0 + $0xa8] sm:$0x3f] }
  0x3e   :  { %v286_v44 = vadd.f32 %v285_v34, %v284_v24  ;;  %v321_v45 = vrot.slane %v320_v35, 1  ;;  %v439_v46 = vrot.slane %v438_v43, 4  ;;  %v50_v47 = vmul.f32 %v38_v18, %v32_v30  ;;  %v380_v30 = vld [vmem:[%s1385_s1 + $0xa8] sm:$0x3f] }
  0x3f   :  { %v398_v48 = vadd.f32 %v397_v42, %v396_v36  ;;  %v71_v49 = vrot.slane %v44_v31, 4  ;;  %v158_v50 = vmul.f32 %v152_v39, %v140_v37  ;;  %v164_v51 = vmul.f32 %v152_v39, %v146_v38  ;;  %v374_v36 = vld [vmem:[%s1384_s0 + $0x168] sm:$0x3f] }
  0x40   :  { %v322_v54 = vadd.f32 %v321_v45, %v320_v35  ;;  %v353_v55 = vadd.f32 %v286_v44, %v239_v40  ;;  %v440_v56 = vadd.f32 %v439_v46, %v438_v43  ;;  %v107_v57 = vrot.slane %v50_v47, 4  ;;  %v24_v45 = vld [vmem:[%s1384_s0 + $0x8] sm:$0xff] }
  0x41   :  { %v399_v58 = vrot.slane %v398_v48, 2  ;;  %v72_v59 = vadd.f32 %v71_v49, %v44_v31  ;;  %v185_v60 = vrot.slane %v158_v50, 4  ;;  %v221_v61 = vrot.slane %v164_v51, 4  ;;  %v30_v46 = vld [vmem:[%s1384_s0 + $0xc8] sm:$0xff] }
  0x42   :  { %v359_v63 = vadd.f32 %v322_v54, %v245_v41  ;;  %v441_v0 = vrot.slane %v440_v56, 2  ;;  %v108_v1 = vadd.f32 %v107_v57, %v50_v47  ;;  %v272_v2 = vmul.f32 %v266_v53, %v254_v52  ;;  %v138_v52 = vld [vmem:[%s1384_s0 + $0x38] sm:$0xff] }
  0x43   :  { %v400_v3 = vadd.f32 %v399_v58, %v398_v48  ;;  %v73_v4 = vrot.slane %v72_v59, 2  ;;  %v186_v5 = vadd.f32 %v185_v60, %v158_v50  ;;  %v222_v6 = vadd.f32 %v221_v61, %v164_v51  ;;  %v36_v51 = vld [vmem:[%s1385_s1 + $0x8] sm:$0xff] }
  0x44   :  { %v442_v7 = vadd.f32 %v441_v0, %v440_v56  ;;  %v109_v8 = vrot.slane %v108_v1, 2  ;;  %v278_v9 = vmul.f32 %v266_v53, %v260_v62  ;;  %v299_v10 = vrot.slane %v272_v2, 4  ;;  %v150_v53 = vld [vmem:[%s1385_s1 + $0x38] sm:$0xff] }
  0x45   :  { %v401_v13 = vrot.slane %v400_v3, 1  ;;  %v74_v14 = vadd.f32 %v73_v4, %v72_v59  ;;  %v187_v15 = vrot.slane %v186_v5, 2  ;;  %v223_v16 = vrot.slane %v222_v6, 2  ;;  %v144_v62 = vld [vmem:[%s1384_s0 + $0xf8] sm:$0xff]  ;;  %v264_v4 = vld [vmem:[%s1385_s1 + $0x68] sm:$0xff] }
  0x46   :  { %v443_v17 = vrot.slane %v442_v7, 1  ;;  %v110_v18 = vadd.f32 %v109_v8, %v108_v1  ;;  %v300_v19 = vadd.f32 %v299_v10, %v272_v2  ;;  %v335_v20 = vrot.slane %v278_v9, 4 }
  0x47   :  { %v402_v21 = vadd.f32 %v401_v13, %v400_v3  ;;  %v75_v22 = vrot.slane %v74_v14, 1  ;;  %v188_v23 = vadd.f32 %v187_v15, %v186_v5  ;;  %v224_v24 = vadd.f32 %v223_v16, %v222_v6  ;;  %v252_v3 = vld [vmem:[%s1384_s0 + $0x68] sm:$0xff] }
  0x48   :  { %v444_v25 = vadd.f32 %v443_v17, %v442_v7  ;;  %v111_v26 = vrot.slane %v110_v18, 1  ;;  %v301_v27 = vrot.slane %v300_v19, 2  ;;  %v336_v28 = vadd.f32 %v335_v20, %v278_v9  ;;  %v258_v13 = vld [vmem:[%s1384_s0 + $0x128] sm:$0xff] }
  0x49   :  { %v480_v31 = vadd.f32 %v402_v21, %v353_v55  ;;  %v76_v33 = vadd.f32 %v75_v22, %v74_v14  ;;  %v189_v34 = vrot.slane %v188_v23, 1  ;;  %v225_v35 = vrot.slane %v224_v24, 1  ;;  %v583_v22 = vld [vmem:[%s1387_s3 + $0x210] sm:$0xff] }
  0x4a   :  { %v486_v37 = vadd.f32 %v444_v25, %v359_v63  ;;  %v112_v38 = vadd.f32 %v111_v26, %v110_v18  ;;  %v302_v39 = vadd.f32 %v301_v27, %v300_v19  ;;  %v337_v40 = vrot.slane %v336_v28, 2  ;;  %735 = vmatpush.msrb.mxu0 %v583_v22 }
  0x4b   :  { %v493_v41 = vadd.f32 %v1079_v32, %v480_v31  ;;  %v190_v42 = vadd.f32 %v189_v34, %v188_v23  ;;  %v226_v43 = vadd.f32 %v225_v35, %v224_v24  ;;  %v386_v44 = vmul.f32 %v380_v30, %v368_v29  ;;  %v600_v23 = vld [vmem:[%s1387_s3 + $0x298] sm:$0xff]  ;;  %v582_v24 = vld [vmem:[%s1387_s3 + $0x208] sm:$0xff]  ;;  %v599_v29 = vld [vmem:[%s1387_s3 + $0x290] sm:$0xff] }
  0x4c   :  { %v499_v47 = vadd.f32 %v1079_v32, %v486_v37  ;;  %v303_v48 = vrot.slane %v302_v39, 1  ;;  %v338_v49 = vadd.f32 %v337_v40, %v336_v28  ;;  %v392_v50 = vmul.f32 %v380_v30, %v374_v36  ;;  %754 = vmatpush.msrb.mxu1 %v600_v23  ;;  %v581_v35 = vld [vmem:[%s1387_s3 + $0x200] sm:$0xff]  ;;  %v598_v36 = vld [vmem:[%s1387_s3 + $0x288] sm:$0xff]  ;;  %736 = vmatpush.msrb.mxu0 %v582_v24 }
  0x4d   :  { %v505_v54 = vmax.f32 %v493_v41, 0.0  ;;  %v242_v55 = vadd.f32 %v190_v42, %v76_v33  ;;  %v248_v56 = vadd.f32 %v226_v43, %v112_v38  ;;  %v417_v57 = vsel %vm395_vm0, %v386_v44, 0.0 }
  0x4e   :  { %v511_v58 = vmax.f32 %v499_v47, 0.0  ;;  %v304_v59 = vadd.f32 %v303_v48, %v302_v39  ;;  %v339_v60 = vrot.slane %v338_v49, 1  ;;  %v418_v61 = vrot.slane %v417_v57, 4  ;;  %755 = vmatpush.msrb.mxu1 %v599_v29  ;;  %737 = vmatpush.msrb.mxu0 %v581_v35 }
  0x4f   :  { %v459_v63 = vsel %vm395_vm0, %v392_v50, 0.0  ;;  %v42_v0 = vmul.f32 %v36_v51, %v24_v45  ;;  %v48_v1 = vmul.f32 %v36_v51, %v30_v46  ;;  %v156_v2 = vmul.f32 %v150_v53, %v138_v52 }
  0x50   :  { %v630_v5 = vsel %vm629_vm1, %v511_v58, %v505_v54  ;;  %v340_v6 = vadd.f32 %v339_v60, %v338_v49  ;;  %v356_v7 = vadd.f32 %v304_v59, %v242_v55  ;;  %v419_v8 = vadd.f32 %v418_v61, %v417_v57  ;;  %756 = vmatpush.msrb.mxu1 %v598_v36  ;;  %v372_v58 = vld [vmem:[%s1384_s0 + $0x158] sm:$0x3f] }
  0x51   :  { %658 = vmatmul.f32.vlgmr.msra.gmra.mxu0 %v630_v5  ;;  %v460_v9 = vrot.slane %v459_v63, 4  ;;  %v59_v10 = vrot.slane %v42_v0, 4  ;;  %v95_v11 = vrot.slane %v48_v1, 4  ;;  %v162_v12 = vmul.f32 %v150_v53, %v144_v62  ;;  %v366_v53 = vld [vmem:[%s1384_s0 + $0x98] sm:$0x3f] }
  0x52   :  { %v362_v14 = vadd.f32 %v340_v6, %v248_v56  ;;  %v420_v15 = vrot.slane %v419_v8, 2  ;;  %v173_v16 = vrot.slane %v156_v2, 4  ;;  %v270_v17 = vmul.f32 %v264_v4, %v252_v3  ;;  %v378_v59 = vld [vmem:[%s1385_s1 + $0x98] sm:$0x3f] }
  0x53   :  { %v461_v18 = vadd.f32 %v460_v9, %v459_v63  ;;  %v60_v19 = vadd.f32 %v59_v10, %v42_v0  ;;  %v96_v20 = vadd.f32 %v95_v11, %v48_v1  ;;  %v209_v21 = vrot.slane %v162_v12, 4  ;;  %v33_v9 = vld [vmem:[%s1384_s0 + $0xe0] sm:$0xff] }
  0x54   :  { %v421_v25 = vadd.f32 %v420_v15, %v419_v8  ;;  %v174_v26 = vadd.f32 %v173_v16, %v156_v2  ;;  %v276_v27 = vmul.f32 %v264_v4, %v258_v13  ;;  %v287_v28 = vrot.slane %v270_v17, 4  ;;  %v27_v8 = vld [vmem:[%s1384_s0 + $0x20] sm:$0xff]  ;;  %v153_v16 = vld [vmem:[%s1385_s1 + $0x50] sm:$0xff] }
  0x55   :  { %v462_v30 = vrot.slane %v461_v18, 2  ;;  %v61_v31 = vrot.slane %v60_v19, 2  ;;  %v97_v33 = vrot.slane %v96_v20, 2  ;;  %v210_v34 = vadd.f32 %v209_v21, %v162_v12  ;;  %v39_v15 = vld [vmem:[%s1385_s1 + $0x20] sm:$0xff]  ;;  %v147_v21 = vld [vmem:[%s1384_s0 + $0x110] sm:$0xff] }
  0x56   :  { %v422_v37 = vrot.slane %v421_v25, 1  ;;  %v175_v38 = vrot.slane %v174_v26, 2  ;;  %v288_v39 = vadd.f32 %v287_v28, %v270_v17  ;;  %v323_v40 = vrot.slane %v276_v27, 4 }
  0x57   :  { %v463_v41 = vadd.f32 %v462_v30, %v461_v18  ;;  %v62_v42 = vadd.f32 %v61_v31, %v60_v19  ;;  %v98_v43 = vadd.f32 %v97_v33, %v96_v20  ;;  %v211_v44 = vrot.slane %v210_v34, 2  ;;  %v255_v30 = vld [vmem:[%s1384_s0 + $0x80] sm:$0xff] }
  0x58   :  { %v423_v45 = vadd.f32 %v422_v37, %v421_v25  ;;  %v176_v46 = vadd.f32 %v175_v38, %v174_v26  ;;  %v289_v47 = vrot.slane %v288_v39, 2  ;;  %v324_v48 = vadd.f32 %v323_v40, %v276_v27  ;;  %v267_v31 = vld [vmem:[%s1385_s1 + $0x80] sm:$0xff] }
  0x59   :  { %v464_v49 = vrot.slane %v463_v41, 1  ;;  %v63_v50 = vrot.slane %v62_v42, 1  ;;  %v99_v51 = vrot.slane %v98_v43, 1  ;;  %v212_v52 = vadd.f32 %v211_v44, %v210_v34  ;;  %v261_v37 = vld [vmem:[%s1384_s0 + $0x140] sm:$0xff] }
  0x5a   :  { %v483_v54 = vadd.f32 %v423_v45, %v356_v7  ;;  %v177_v55 = vrot.slane %v176_v46, 1  ;;  %v290_v56 = vadd.f32 %v289_v47, %v288_v39  ;;  %v325_v57 = vrot.slane %v324_v48, 2 }
  0x5b   :  { %v465_v60 = vadd.f32 %v464_v49, %v463_v41  ;;  %v64_v61 = vadd.f32 %v63_v50, %v62_v42  ;;  %v100_v62 = vadd.f32 %v99_v51, %v98_v43  ;;  %v213_v63 = vrot.slane %v212_v52, 1  ;;  %v597_v50 = vld [vmem:[%s1387_s3 + $0x280] sm:$0xff] }
  0x5c   :  { %v496_v0 = vadd.f32 %v1079_v32, %v483_v54  ;;  %v178_v1 = vadd.f32 %v177_v55, %v176_v46  ;;  %v291_v2 = vrot.slane %v290_v56, 1  ;;  %v326_v3 = vadd.f32 %v325_v57, %v324_v48  ;;  %757 = vmatpush.msrb.mxu1 %v597_v50 }
  0x5d   :  { %v489_v4 = vadd.f32 %v465_v60, %v362_v14  ;;  %v214_v5 = vadd.f32 %v213_v63, %v212_v52  ;;  %v384_v6 = vmul.f32 %v378_v59, %v366_v53  ;;  %v390_v7 = vmul.f32 %v378_v59, %v372_v58  ;;  %v141_v14 = vld [vmem:[%s1384_s0 + $0x50] sm:$0xff] }
  0x5e   :  { %v508_v10 = vmax.f32 %v496_v0, 0.0  ;;  %v240_v11 = vadd.f32 %v178_v1, %v64_v61  ;;  %v292_v12 = vadd.f32 %v291_v2, %v290_v56  ;;  %v327_v13 = vrot.slane %v326_v3, 1 }
  0x5f   :  { %v502_v17 = vadd.f32 %v1079_v32, %v489_v4  ;;  %v246_v18 = vadd.f32 %v214_v5, %v100_v62  ;;  %v403_v19 = vsel %vm395_vm0, %v384_v6, 0.0  ;;  %v445_v20 = vsel %vm395_vm0, %v390_v7, 0.0 }
  0x60   :  { %v328_v22 = vadd.f32 %v327_v13, %v326_v3  ;;  %v354_v23 = vadd.f32 %v292_v12, %v240_v11  ;;  %v404_v24 = vrot.slane %v403_v19, 4  ;;  %v446_v25 = vrot.slane %v445_v20, 4  ;;  %v369_v11 = vld [vmem:[%s1384_s0 + $0xb0] sm:$0x3f] }
  0x61   :  { %v514_v26 = vmax.f32 %v502_v17, 0.0  ;;  %v45_v27 = vmul.f32 %v39_v15, %v27_v8  ;;  %v51_v28 = vmul.f32 %v39_v15, %v33_v9  ;;  %v159_v29 = vmul.f32 %v153_v16, %v141_v14  ;;  %v381_v17 = vld [vmem:[%s1385_s1 + $0xb0] sm:$0x3f] }
  0x62   :  { %v360_v33 = vadd.f32 %v328_v22, %v246_v18  ;;  %v405_v34 = vadd.f32 %v404_v24, %v403_v19  ;;  %v447_v35 = vadd.f32 %v446_v25, %v445_v20  ;;  %v165_v36 = vmul.f32 %v153_v16, %v147_v21  ;;  %v375_v16 = vld [vmem:[%s1384_s0 + $0x170] sm:$0x3f] }
  0x63   :  { %v633_v38 = vsel %vm629_vm1, %v514_v26, %v508_v10  ;;  %v77_v39 = vrot.slane %v45_v27, 4  ;;  %v113_v40 = vrot.slane %v51_v28, 4  ;;  %v191_v41 = vrot.slane %v159_v29, 4  ;;  %v28_v26 = vld [vmem:[%s1384_s0 + $0x28] sm:$0xff] }
  0x64   :  { %718 = vmatmul.f32.vlgmr.msra.gmra.mxu3 %v633_v38  ;;  %v406_v42 = vrot.slane %v405_v34, 2  ;;  %v448_v43 = vrot.slane %v447_v35, 2  ;;  %v227_v44 = vrot.slane %v165_v36, 4  ;;  %v273_v45 = vmul.f32 %v267_v31, %v255_v30  ;;  %v142_v38 = vld [vmem:[%s1384_s0 + $0x58] sm:$0xff] }
  0x65   :  { %v78_v46 = vadd.f32 %v77_v39, %v45_v27  ;;  %v114_v47 = vadd.f32 %v113_v40, %v51_v28  ;;  %v192_v48 = vadd.f32 %v191_v41, %v159_v29  ;;  %v279_v49 = vmul.f32 %v267_v31, %v261_v37  ;;  %v40_v27 = vld [vmem:[%s1385_s1 + $0x28] sm:$0xff]  ;;  %v154_v39 = vld [vmem:[%s1385_s1 + $0x58] sm:$0xff] }
  0x66   :  { %v407_v51 = vadd.f32 %v406_v42, %v405_v34  ;;  %v449_v52 = vadd.f32 %v448_v43, %v447_v35  ;;  %v228_v53 = vadd.f32 %v227_v44, %v165_v36  ;;  %v305_v54 = vrot.slane %v273_v45, 4  ;;  %v34_v37 = vld [vmem:[%s1384_s0 + $0xe8] sm:$0xff]  ;;  %v148_v44 = vld [vmem:[%s1384_s0 + $0x118] sm:$0xff] }
  0x67   :  { %v79_v55 = vrot.slane %v78_v46, 2  ;;  %v115_v56 = vrot.slane %v114_v47, 2  ;;  %v193_v57 = vrot.slane %v192_v48, 2  ;;  %v341_v58 = vrot.slane %v279_v49, 4 }
  0x68   :  { %v408_v59 = vrot.slane %v407_v51, 1  ;;  %v450_v60 = vrot.slane %v449_v52, 1  ;;  %v229_v61 = vrot.slane %v228_v53, 2  ;;  %v306_v62 = vadd.f32 %v305_v54, %v273_v45  ;;  %v256_v45 = vld [vmem:[%s1384_s0 + $0x88] sm:$0xff] }
  0x69   :  { %v80_v63 = vadd.f32 %v79_v55, %v78_v46  ;;  %v116_v0 = vadd.f32 %v115_v56, %v114_v47  ;;  %v194_v1 = vadd.f32 %v193_v57, %v192_v48  ;;  %v342_v2 = vadd.f32 %v341_v58, %v279_v49  ;;  %v268_v46 = vld [vmem:[%s1385_s1 + $0x88] sm:$0xff] }
  0x6a   :  { %v409_v3 = vadd.f32 %v408_v59, %v407_v51  ;;  %v451_v4 = vadd.f32 %v450_v60, %v449_v52  ;;  %v230_v5 = vadd.f32 %v229_v61, %v228_v53  ;;  %v307_v6 = vrot.slane %v306_v62, 2  ;;  %v262_v51 = vld [vmem:[%s1384_s0 + $0x148] sm:$0xff] }
  0x6b   :  { %v81_v7 = vrot.slane %v80_v63, 1  ;;  %v117_v8 = vrot.slane %v116_v0, 1  ;;  %v195_v9 = vrot.slane %v194_v1, 1  ;;  %v343_v10 = vrot.slane %v342_v2, 2 }
  0x6c   :  { %v481_v12 = vadd.f32 %v409_v3, %v354_v23  ;;  %v487_v13 = vadd.f32 %v451_v4, %v360_v33  ;;  %v231_v15 = vrot.slane %v230_v5, 1  ;;  %v308_v14 = vadd.f32 %v307_v6, %v306_v62 }
  0x6d   :  { %v82_v18 = vadd.f32 %v81_v7, %v80_v63  ;;  %v118_v19 = vadd.f32 %v117_v8, %v116_v0  ;;  %v196_v20 = vadd.f32 %v195_v9, %v194_v1  ;;  %v344_v21 = vadd.f32 %v343_v10, %v342_v2 }
  0x6e   :  { %v494_v22 = vadd.f32 %v1079_v32, %v481_v12  ;;  %v500_v24 = vadd.f32 %v1079_v32, %v487_v13  ;;  %v232_v23 = vadd.f32 %v231_v15, %v230_v5  ;;  %v309_v25 = vrot.slane %v308_v14, 1 }
  0x6f   :  { %v243_v28 = vadd.f32 %v196_v20, %v82_v18  ;;  %v345_v29 = vrot.slane %v344_v21, 1  ;;  %v387_v30 = vmul.f32 %v381_v17, %v369_v11  ;;  %v393_v31 = vmul.f32 %v381_v17, %v375_v16 }
  0x70   :  { %v506_v33 = vmax.f32 %v494_v22, 0.0  ;;  %v512_v34 = vmax.f32 %v500_v24, 0.0  ;;  %v249_v35 = vadd.f32 %v232_v23, %v118_v19  ;;  %v310_v36 = vadd.f32 %v309_v25, %v308_v14 }
  0x71   :  { %v346_v40 = vadd.f32 %v345_v29, %v344_v21  ;;  %v424_v41 = vsel %vm395_vm0, %v387_v30, 0.0  ;;  %v466_v42 = vsel %vm395_vm0, %v393_v31, 0.0  ;;  %v46_v43 = vmul.f32 %v40_v27, %v28_v26  ;;  %v370_v26 = vld [vmem:[%s1384_s0 + $0xb8] sm:$0x3f] }
  0x72   :  { %v631_v47 = vsel %vm629_vm1, %v512_v34, %v506_v33  ;;  %v357_v48 = vadd.f32 %v310_v36, %v243_v28  ;;  %v425_v49 = vrot.slane %v424_v41, 4  ;;  %v467_v50 = vrot.slane %v466_v42, 4  ;;  %v376_v34 = vld [vmem:[%s1384_s0 + $0x178] sm:$0x3f] }
  0x73   :  { %678 = vmatmul.f32.vlgmr.msra.gmra.mxu1 %v631_v47  ;;  %v363_v52 = vadd.f32 %v346_v40, %v249_v35  ;;  %v52_v53 = vmul.f32 %v40_v27, %v34_v37  ;;  %v83_v54 = vrot.slane %v46_v43, 4  ;;  %v160_v55 = vmul.f32 %v154_v39, %v142_v38  ;;  %v382_v27 = vld [vmem:[%s1385_s1 + $0xb8] sm:$0x3f] }
  0x74   :  { %v426_v56 = vadd.f32 %v425_v49, %v424_v41  ;;  %v468_v57 = vadd.f32 %v467_v50, %v466_v42  ;;  %v166_v58 = vmul.f32 %v154_v39, %v148_v44  ;;  %v274_v59 = vmul.f32 %v268_v46, %v256_v45 }
  0x75   :  { %v84_v60 = vadd.f32 %v83_v54, %v46_v43  ;;  %v119_v61 = vrot.slane %v52_v53, 4  ;;  %v197_v62 = vrot.slane %v160_v55, 4  ;;  %v280_v63 = vmul.f32 %v268_v46, %v262_v51 }
  0x76   :  { %v427_v0 = vrot.slane %v426_v56, 2  ;;  %v469_v1 = vrot.slane %v468_v57, 2  ;;  %v233_v2 = vrot.slane %v166_v58, 4  ;;  %v311_v3 = vrot.slane %v274_v59, 4 }
  0x77   :  { %v85_v4 = vrot.slane %v84_v60, 2  ;;  %v120_v5 = vadd.f32 %v119_v61, %v52_v53  ;;  %v198_v6 = vadd.f32 %v197_v62, %v160_v55  ;;  %v347_v7 = vrot.slane %v280_v63, 4 }
  0x78   :  { %v428_v8 = vadd.f32 %v427_v0, %v426_v56  ;;  %v470_v9 = vadd.f32 %v469_v1, %v468_v57  ;;  %v234_v10 = vadd.f32 %v233_v2, %v166_v58  ;;  %v312_v11 = vadd.f32 %v311_v3, %v274_v59 }
  0x79   :  { %v86_v12 = vadd.f32 %v85_v4, %v84_v60  ;;  %v121_v13 = vrot.slane %v120_v5, 2  ;;  %v199_v15 = vrot.slane %v198_v6, 2  ;;  %v348_v14 = vadd.f32 %v347_v7, %v280_v63 }
  0x7a   :  { %v429_v16 = vrot.slane %v428_v8, 1  ;;  %v471_v17 = vrot.slane %v470_v9, 1  ;;  %v235_v18 = vrot.slane %v234_v10, 2  ;;  %v313_v19 = vrot.slane %v312_v11, 2 }
  0x7b   :  { %v122_v20 = vadd.f32 %v121_v13, %v120_v5  ;;  %v200_v21 = vadd.f32 %v199_v15, %v198_v6  ;;  %v349_v22 = vrot.slane %v348_v14, 2  ;;  %v87_v28 = vrot.slane %v86_v12, 1  ;;  %v781_v15 = vld [vmem:[%s1388_s4] ss:$0 sm:$0xff] }
  0x7c   :  { %v430_v24 = vadd.f32 %v429_v16, %v428_v8  ;;  %v472_v23 = vadd.f32 %v471_v17, %v470_v9  ;;  %v236_v25 = vadd.f32 %v235_v18, %v234_v10  ;;  %v314_v29 = vadd.f32 %v313_v19, %v312_v11 }
  0x7d   :  { %v201_v33 = vrot.slane %v200_v21, 1  ;;  %v123_v35 = vrot.slane %v122_v20, 1  ;;  %v350_v36 = vadd.f32 %v349_v22, %v348_v14  ;;  %v388_v37 = vmul.f32 %v382_v27, %v370_v26 }
  0x7e   :  { %v484_v30 = vadd.f32 %v430_v24, %v357_v48  ;;  %v490_v31 = vadd.f32 %v472_v23, %v363_v52  ;;  %v237_v40 = vrot.slane %v236_v25, 1  ;;  %v88_v41 = vadd.f32 %v87_v28, %v86_v12 }
  0x7f   :  { %v315_v42 = vrot.slane %v314_v29, 1  ;;  %v394_v43 = vmul.f32 %v382_v27, %v376_v34  ;;  %v431_v44 = vsel %vm395_vm0, %v388_v37, 0.0  ;;  %v202_v47 = vadd.f32 %v201_v33, %v200_v21 }
  0x80   :  { %v497_v38 = vadd.f32 %v1079_v32, %v484_v30  ;;  %v503_v39 = vadd.f32 %v1079_v32, %v490_v31  ;;  %v432_v48 = vrot.slane %v431_v44, 4  ;;  %v124_v49 = vadd.f32 %v123_v35, %v122_v20 }
  0x81   :  { %v351_v50 = vrot.slane %v350_v36, 1  ;;  %v473_v51 = vsel %vm395_vm0, %v394_v43, 0.0  ;;  %v238_v53 = vadd.f32 %v237_v40, %v236_v25  ;;  %v244_v56 = vadd.f32 %v202_v47, %v88_v41 }
  0x82   :  { %v509_v45 = vmax.f32 %v497_v38, 0.0  ;;  %v515_v46 = vmax.f32 %v503_v39, 0.0  ;;  %v433_v54 = vadd.f32 %v432_v48, %v431_v44  ;;  %v474_v55 = vrot.slane %v473_v51, 4 }
  0x83   :  { %v316_v57 = vadd.f32 %v315_v42, %v314_v29  ;;  %v250_v60 = vadd.f32 %v238_v53, %v124_v49  ;;  %v352_v61 = vadd.f32 %v351_v50, %v350_v36  ;;  %vm762_vm2 = vcmask 156672  }
  0x84   :  { %v634_v52 = vsel %vm629_vm1, %v515_v46, %v509_v45  ;;  %v434_v58 = vrot.slane %v433_v54, 2  ;;  %v475_v59 = vadd.f32 %v474_v55, %v473_v51 }
  0x85   :  { %738 = vmatmul.f32.vlgmr.msrb.gmra.mxu0 %v634_v52  ;;  %v358_v0 = vadd.f32 %v316_v57, %v244_v56  ;;  %v364_v3 = vadd.f32 %v352_v61, %v250_v60 }
  0x86   :  { %v435_v62 = vadd.f32 %v434_v58, %v433_v54  ;;  %v476_v63 = vrot.slane %v475_v59, 2 }
  0x88   :  { %v436_v1 = vrot.slane %v435_v62, 1  ;;  %v477_v2 = vadd.f32 %v476_v63, %v475_v59 }
  0x8a   :  { %v437_v4 = vadd.f32 %v436_v1, %v435_v62  ;;  %v478_v5 = vrot.slane %v477_v2, 1 }
  0x8c   :  { %v479_v6 = vadd.f32 %v478_v5, %v477_v2  ;;  %v485_v7 = vadd.f32 %v437_v4, %v358_v0 }
  0x8e   :  { %v491_v8 = vadd.f32 %v479_v6, %v364_v3  ;;  %v498_v9 = vadd.f32 %v1079_v32, %v485_v7 }
  0x90   :  { %v504_v10 = vadd.f32 %v1079_v32, %v491_v8  ;;  %v510_v11 = vmax.f32 %v498_v9, 0.0 }
  0x92   :  { %v516_v12 = vmax.f32 %v504_v10, 0.0 }
  0x94   :  { %v635_v13 = vsel %vm629_vm1, %v516_v12, %v510_v11 }
  0x95   :  { %758 = vmatmul.f32.vlgmr.msrb.gmra.mxu1 %v635_v13 }
  0xc0   :  { %v699_v19 = vpop.f32.mrf.mxu2 }
  0xce   :  { %v659_v14 = vpop.f32.mrf.mxu0 }
  0xcf   :  { %v660_v16 = vadd.f32 %v781_v15, %v659_v14 }
  0xe7   :  { %v719_v21 = vpop.f32.mrf.mxu3 }
  0xf0   :  { %v679_v17 = vpop.f32.mrf.mxu1 }
  0xf1   :  { %v680_v18 = vadd.f32 %v679_v17, %v660_v16 }
  0xf3   :  { %v700_v20 = vadd.f32 %v699_v19, %v680_v18 }
  0xf5   :  { %v720_v22 = vadd.f32 %v719_v21, %v700_v20 }
 0x102   :  { %v739_v24 = vpop.f32.mrf.mxu0 }
 0x103   :  { %v740_v23 = vadd.f32 %v739_v24, %v720_v22 }
 0x112   :  { %v759_v32 = vpop.f32.mrf.mxu1 }
 0x113   :  { %v760_v25 = vadd.f32 %v759_v32, %v740_v23 }
 0x115   :  { %763 = vst.msk [vmem:[#allocation3] sm:$0x3] %vm762_vm2, %v760_v25 }
 0x116   :  { %774 = dma.vmem_to_hbm [thread:$0]  %s770_s23, 32, %s772_s26, [#allocation4]  }
 0x117   :  { %806 = dma.done.wait [#allocation4], 32  }
 0x118   :  { %807 = vsyncadd [#allocation4], 4294967264 }
 0x119   :  { %779 = vsyncpa [#allocation4], 1 }

</bundles_post_ra>
